<compile_context>
chip_gen: v6e
topology: v6e:2x2x1
jax: 0.10.0
libtpu: 0.0.40
codegen_flags: <defaults>
</compile_context>

<pallas_src>
import numpy as np
import jax
import jax.numpy as jnp
from jax import lax
from jax.experimental import pallas as pl
from jax.experimental.pallas import tpu as pltpu

POOL = 11            # AdaptiveAvgPool2d(11)
PP = POOL * POOL     # 121 pooled spatial positions
PP_PAD = 128         # lane-dense padded pooled spatial dim
EPS = 1e-5


# ----------------------------- Pallas kernel --------------------------------
def ipf_kernel(x_ref, y_ref, poolT_ref, w1_ref, b1_ref, w3_ref, b3_ref,
               mask_ref, o_ref, tap_ref):
    f32 = jnp.float32
    bf16 = jnp.bfloat16
    Nb, C, HW = x_ref.shape
    R = Nb * C

    # AdaptiveAvgPool2d(11): two MXU matmuls against the resident pooling
    # matrix (no concat copy).  Padded columns of poolT are zero, so lanes
    # >= 121 of xp/yp are zero.
    poolT = poolT_ref[...]                                            # (HW,128) bf16
    xp = jnp.dot(x_ref[...].reshape(R, HW).astype(bf16), poolT,
                 preferred_element_type=f32)                          # (R,128) f32
    yp = jnp.dot(y_ref[...].reshape(R, HW).astype(bf16), poolT,
                 preferred_element_type=f32)                          # (R,128) f32

    w1 = w1_ref[...]                                                  # (C,C)  bf16
    b1 = b1_ref[...]                                                  # (C,128) f32
    w3 = w3_ref[...]                                                  # (C,9C) bf16
    b3 = b3_ref[...]                                                  # (C,128) f32

    # Per batch element: FC (1x1 conv, BN scale folded) + ReLU, gated blend,
    # then the 9 shifted taps written straight into the (9C, Nb*128) scratch.
    for n in range(Nb):
        xp_n = xp[n * C:(n + 1) * C]                                  # (C,128)
        yp_n = yp[n * C:(n + 1) * C]
        z = jnp.dot(w1, (xp_n + yp_n).astype(bf16),
                    preferred_element_type=f32) + b1                  # (C,128)
        wei = jnp.maximum(z, 0.0)
        # x*wei + y*(1-wei) == yp + (xp - yp)*wei
        xo_n = yp_n + (xp_n - yp_n) * wei                             # (C,128) f32

        for k in range(9):
            dy, dx = k // 3 - 1, k % 3 - 1
            off = dy * POOL + dx          # flattened-lane offset of the source
            rolled = xo_n if off == 0 else pltpu.roll(xo_n, (-off) % PP_PAD,
                                                      axis=1)
            tap_ref[k * C:(k + 1) * C, n * PP_PAD:(n + 1) * PP_PAD] = (
                rolled * mask_ref[k]).astype(bf16)

    # BasicConv2d: one fused 3x3-conv matmul, M=C, K=9C, N=Nb*128 (BN scale
    # folded into w3; no ReLU in BasicConv2d.forward).
    conv = jnp.dot(w3, tap_ref[...], preferred_element_type=f32)      # (C,Nb*128)
    for n in range(Nb):
        o_ref[n] = conv[:, n * PP_PAD:(n + 1) * PP_PAD] + b3


# ------------------------------ wrapper --------------------------------------
def _pick_nb(N, C):
    """Batch elements per grid step.

    Prefer grid length >= 2 (v7x megacore sharding via "parallel"), then the
    fattest block whose pooling-matmul M = 2*nb*C stays <= ~1024 rows
    (amortizes the ~0.35us/step pipeline overhead on v5e/v6e).  Never crashes:
    falls back to nb=1 for very large C.
    """
    divisors = [nb for nb in range(1, N + 1) if N % nb == 0]
    capped = [nb for nb in divisors if 2 * nb * C <= 1024] or [1]
    multi_step = [nb for nb in capped if N // nb >= 2]
    return max(multi_step) if multi_step else max(capped)


def ipf_forward(x, y, params):
    N, C, H, W = x.shape
    assert C % 8 == 0, "kernel assumes channel count is a multiple of 8"
    HW = H * W
    nb = _pick_nb(N, C)
    x2 = x.reshape(N, C, HW).astype(jnp.float32)
    y2 = y.reshape(N, C, HW).astype(jnp.float32)

    out = pl.pallas_call(
        ipf_kernel,
        out_shape=jax.ShapeDtypeStruct((N, C, PP_PAD), jnp.float32),
        grid=(N // nb,),
        in_specs=[
            pl.BlockSpec((nb, C, HW), lambda g: (g, 0, 0)),        # x
            pl.BlockSpec((nb, C, HW), lambda g: (g, 0, 0)),        # y
            # grid-invariant operands (constant index_map -> stay resident)
            pl.BlockSpec((HW, PP_PAD), lambda g: (0, 0)),          # pooling matrix^T (bf16)
            pl.BlockSpec((C, C), lambda g: (0, 0)),                # folded 1x1 weight (bf16)
            pl.BlockSpec((C, PP_PAD), lambda g: (0, 0)),           # BN1 bias (pre-broadcast)
            pl.BlockSpec((C, 9 * C), lambda g: (0, 0)),            # folded 3x3 weight (bf16)
            pl.BlockSpec((C, PP_PAD), lambda g: (0, 0)),           # BN3 bias (pre-broadcast)
            pl.BlockSpec((9, 1, PP_PAD), lambda g: (0, 0, 0)),     # 3x3 boundary masks
        ],
        out_specs=pl.BlockSpec((nb, C, PP_PAD), lambda g: (g, 0, 0)),
        scratch_shapes=[pltpu.VMEM((9 * C, nb * PP_PAD), jnp.bfloat16)],
        compiler_params=pltpu.CompilerParams(dimension_semantics=("parallel",)),
    )(x2, y2, params["poolT"], params["w1f"], params["b1c"],
      params["w3f"], params["b3c"], params["mask"])

    # slice padded lanes back to 121 and restore NCHW
    return out[..., :PP].reshape(N, C, POOL, POOL)


# ------------------------------ glue / params --------------------------------
def adaptive_pool_matrix(in_size, out_size):
    """PyTorch AdaptiveAvgPool bin weights as an (out, in) matrix."""
    M = np.zeros((out_size, in_size), dtype=np.float32)
    for i in range(out_size):
        start = (i * in_size) // out_size
        end = ((i + 1) * in_size + out_size - 1) // out_size
        M[i, start:end] = 1.0 / float(end - start)
    return M


def make_conv3_masks():
    """(9, 1, 128) validity masks for each 3x3 tap on the 11x11 pooled grid."""
    mask = np.zeros((9, 1, PP_PAD), dtype=np.float32)
    for k in range(9):
        dy, dx = k // 3 - 1, k % 3 - 1
        for yy in range(POOL):
            for xx in range(POOL):
                if 0 <= yy + dy < POOL and 0 <= xx + dx < POOL:
                    mask[k, 0, yy * POOL + xx] = 1.0
    return mask


def make_params(key, C, H, W):
    ks = jax.random.split(key, 10)
    w1 = 0.1 * jax.random.normal(ks[0], (C, C), jnp.float32)        # Conv2d(C,C,1)
    w3 = 0.1 * jax.random.normal(ks[1], (C, C, 3, 3), jnp.float32)  # Conv2d(C,C,3)
    g1 = 1.0 + 0.1 * jax.random.normal(ks[2], (C,), jnp.float32)
    be1 = 0.1 * jax.random.normal(ks[3], (C,), jnp.float32)
    m1 = 0.1 * jax.random.normal(ks[4], (C,), jnp.float32)
    v1 = jax.random.uniform(ks[5], (C,), jnp.float32, 0.5, 1.5)
    g3 = 1.0 + 0.1 * jax.random.normal(ks[6], (C,), jnp.float32)
    be3 = 0.1 * jax.random.normal(ks[7], (C,), jnp.float32)
    m3 = 0.1 * jax.random.normal(ks[8], (C,), jnp.float32)
    v3 = jax.random.uniform(ks[9], (C,), jnp.float32, 0.5, 1.5)

    s1 = g1 / jnp.sqrt(v1 + EPS)
    b1 = be1 - m1 * s1
    s3 = g3 / jnp.sqrt(v3 + EPS)
    b3 = be3 - m3 * s3

    # Separable AdaptiveAvgPool2d(11) matrix, lane-padded with zero columns.
    Ph = adaptive_pool_matrix(H, POOL)
    Pw = adaptive_pool_matrix(W, POOL)
    pool = np.einsum('oh,pw->ophw', Ph, Pw).reshape(PP, H * W)      # (121, HW)
    poolT_f32 = pool.T.astype(np.float32)                           # (HW, 121)
    poolT_pad = np.zeros((H * W, PP_PAD), dtype=np.float32)
    poolT_pad[:, :PP] = poolT_f32

    # BN scales folded into conv weights; kernel-side weights cast to bf16
    # (MXU-native on v5e/v6e/v7x), biases pre-broadcast to (C, 128).
    w1f = w1 * s1[:, None]                                          # (C, C)
    w3_taps = jnp.transpose(w3, (2, 3, 0, 1)).reshape(9, C, C)      # [k, o, i]
    w3_hcat = jnp.transpose(w3_taps, (1, 0, 2)).reshape(C, 9 * C)   # [o, k*C+i]
    w3f = w3_hcat * s3[:, None]

    return dict(
        # kernel-ready (padded / folded / bf16 where consumed by the MXU)
        poolT=jnp.asarray(poolT_pad, jnp.bfloat16),
        w1f=w1f.astype(jnp.bfloat16),
        w3f=w3f.astype(jnp.bfloat16),
        b1c=jnp.broadcast_to(b1[:, None], (C, PP_PAD)).astype(jnp.float32),
        b3c=jnp.broadcast_to(b3[:, None], (C, PP_PAD)).astype(jnp.float32),
        mask=jnp.asarray(make_conv3_masks()),
        # raw f32 (pure-JAX reference)
        poolT_f32=jnp.asarray(poolT_f32),
        w1=w1, w3=w3, s1=s1, b1=b1, s3=s3, b3=b3,
    )


# ----------------------------- pure-JAX reference ----------------------------
def reference_ipf(x, y, params):
    N, C, H, W = x.shape
    hi = lax.Precision.HIGHEST
    poolT = params["poolT_f32"]                                     # (HW, 121)
    xp = jnp.einsum('ncs,sq->ncq', x.reshape(N, C, H * W), poolT,
                    precision=hi).reshape(N, C, POOL, POOL)
    yp = jnp.einsum('ncs,sq->ncq', y.reshape(N, C, H * W), poolT,
                    precision=hi).reshape(N, C, POOL, POOL)
    xy = xp + yp
    z = jnp.einsum('oc,nchw->nohw', params["w1"], xy, precision=hi)
    z = z * params["s1"].reshape(1, C, 1, 1) + params["b1"].reshape(1, C, 1, 1)
    wei = jnp.maximum(z, 0.0)
    xo = xp * wei + yp * (1.0 - wei)
    conv = lax.conv_general_dilated(
        xo, params["w3"], window_strides=(1, 1), padding=((1, 1), (1, 1)),
        dimension_numbers=('NCHW', 'OIHW', 'NCHW'), precision=hi)
    return conv * params["s3"].reshape(1, C, 1, 1) + params["b3"].reshape(1, C, 1, 1)


# --------------------------------- main ---------------------------------------
if __name__ == "__main__":
    key = jax.random.PRNGKey(0)
    kx, ky, kp = jax.random.split(key, 3)

    N, C, H, W = 2, 32, 16, 16
    x = jax.random.normal(kx, (N, C, H, W), jnp.float32)
    y = jax.random.normal(ky, (N, C, H, W), jnp.float32)
    params = make_params(kp, C, H, W)

    out = jax.block_until_ready(ipf_forward(x, y, params))
    ref = jax.block_until_ready(reference_ipf(x, y, params))

    out_np, ref_np = np.asarray(out), np.asarray(ref)
    if not np.allclose(out_np, ref_np, atol=2e-2, rtol=2e-2):
        max_err = float(np.max(np.abs(out_np - ref_np)))
        raise AssertionError(
            f"Pallas IPF kernel does not match reference (max abs err {max_err:.4g})")

    print("KERNEL_OK")
</pallas_src>

<mosaic_0001>
module attributes {stable_mosaic.version = 11 : i64} {
  func.func @ipf_kernel(%arg0: i32, %arg1: memref<1x32x256xf32, #tpu.memory_space<vmem>>, %arg2: memref<1x32x256xf32, #tpu.memory_space<vmem>>, %arg3: memref<256x128xbf16, #tpu.memory_space<vmem>>, %arg4: memref<32x32xbf16, #tpu.memory_space<vmem>>, %arg5: memref<32x128xf32, #tpu.memory_space<vmem>>, %arg6: memref<32x288xbf16, #tpu.memory_space<vmem>>, %arg7: memref<32x128xf32, #tpu.memory_space<vmem>>, %arg8: memref<9x1x128xf32, #tpu.memory_space<vmem>>, %arg9: memref<1x32x128xf32, #tpu.memory_space<vmem>>, %arg10: memref<288x128xbf16, #tpu.memory_space<vmem>>) attributes {dimension_semantics = [#tpu.dimension_semantics<parallel>], iteration_bounds = array<i64: 2>, scalar_prefetch = 0 : i64, scratch_operands = 1 : i64, tpu.core_type = #tpu.core_type<tc>, window_params = [{transform_indices = @transform_0, window_bounds = array<i64: 1, 32, 256>}, {transform_indices = @transform_1, window_bounds = array<i64: 1, 32, 256>}, {pipeline_mode = #tpu.pipeline_mode<synchronous>, transform_indices = @transform_2, window_bounds = array<i64: 256, 128>}, {pipeline_mode = #tpu.pipeline_mode<synchronous>, transform_indices = @transform_3, window_bounds = array<i64: 32, 32>}, {pipeline_mode = #tpu.pipeline_mode<synchronous>, transform_indices = @transform_4, window_bounds = array<i64: 32, 128>}, {pipeline_mode = #tpu.pipeline_mode<synchronous>, transform_indices = @transform_5, window_bounds = array<i64: 32, 288>}, {pipeline_mode = #tpu.pipeline_mode<synchronous>, transform_indices = @transform_6, window_bounds = array<i64: 32, 128>}, {pipeline_mode = #tpu.pipeline_mode<synchronous>, transform_indices = @transform_7, window_bounds = array<i64: 9, 1, 128>}, {transform_indices = @transform_8, window_bounds = array<i64: 1, 32, 128>}]} {
    %c0 = arith.constant 0 : index
    %c0_0 = arith.constant 0 : index
    %0 = vector.load %arg3[%c0, %c0_0] : memref<256x128xbf16, #tpu.memory_space<vmem>>, vector<256x128xbf16>
    %c0_1 = arith.constant 0 : index
    %c0_2 = arith.constant 0 : index
    %c0_3 = arith.constant 0 : index
    %1 = vector.load %arg1[%c0_1, %c0_2, %c0_3] : memref<1x32x256xf32, #tpu.memory_space<vmem>>, vector<1x32x256xf32>
    %2 = vector.shape_cast %1 : vector<1x32x256xf32> to vector<32x256xf32>
    %3 = arith.truncf %2 : vector<32x256xf32> to vector<32x256xbf16>
    %cst = arith.constant dense<0.000000e+00> : vector<32x128xf32>
    %4 = tpu.matmul %3, %0, %cst {dimension_numbers = #tpu.dot_dimension_numbers<[1], [0], [0], [1], [0, 0, 1, 1], [], []>} : vector<32x256xbf16>, vector<256x128xbf16>, vector<32x128xf32> -> vector<32x128xf32>
    %c0_4 = arith.constant 0 : index
    %c0_5 = arith.constant 0 : index
    %c0_6 = arith.constant 0 : index
    %5 = vector.load %arg2[%c0_4, %c0_5, %c0_6] : memref<1x32x256xf32, #tpu.memory_space<vmem>>, vector<1x32x256xf32>
    %6 = vector.shape_cast %5 : vector<1x32x256xf32> to vector<32x256xf32>
    %7 = arith.truncf %6 : vector<32x256xf32> to vector<32x256xbf16>
    %cst_7 = arith.constant dense<0.000000e+00> : vector<32x128xf32>
    %8 = tpu.matmul %7, %0, %cst_7 {dimension_numbers = #tpu.dot_dimension_numbers<[1], [0], [0], [1], [0, 0, 1, 1], [], []>} : vector<32x256xbf16>, vector<256x128xbf16>, vector<32x128xf32> -> vector<32x128xf32>
    %c0_8 = arith.constant 0 : index
    %c0_9 = arith.constant 0 : index
    %9 = vector.load %arg4[%c0_8, %c0_9] : memref<32x32xbf16, #tpu.memory_space<vmem>>, vector<32x32xbf16>
    %c0_10 = arith.constant 0 : index
    %c0_11 = arith.constant 0 : index
    %10 = vector.load %arg5[%c0_10, %c0_11] : memref<32x128xf32, #tpu.memory_space<vmem>>, vector<32x128xf32>
    %c0_12 = arith.constant 0 : index
    %c0_13 = arith.constant 0 : index
    %11 = vector.load %arg6[%c0_12, %c0_13] : memref<32x288xbf16, #tpu.memory_space<vmem>>, vector<32x288xbf16>
    %c0_14 = arith.constant 0 : index
    %c0_15 = arith.constant 0 : index
    %12 = vector.load %arg7[%c0_14, %c0_15] : memref<32x128xf32, #tpu.memory_space<vmem>>, vector<32x128xf32>
    %13 = arith.addf %4, %8 : vector<32x128xf32>
    %14 = arith.truncf %13 : vector<32x128xf32> to vector<32x128xbf16>
    %cst_16 = arith.constant dense<0.000000e+00> : vector<32x128xf32>
    %15 = tpu.matmul %9, %14, %cst_16 {dimension_numbers = #tpu.dot_dimension_numbers<[1], [0], [0], [1], [0, 0, 1, 1], [], []>} : vector<32x32xbf16>, vector<32x128xbf16>, vector<32x128xf32> -> vector<32x128xf32>
    %16 = arith.addf %15, %10 : vector<32x128xf32>
    %cst_17 = arith.constant 0.000000e+00 : f32
    %17 = vector.broadcast %cst_17 : f32 to vector<32x128xf32>
    %18 = arith.maximumf %16, %17 : vector<32x128xf32>
    %19 = arith.subf %4, %8 : vector<32x128xf32>
    %20 = arith.mulf %19, %18 : vector<32x128xf32>
    %21 = arith.addf %8, %20 : vector<32x128xf32>
    %c12_i32 = arith.constant 12 : i32
    %22 = tpu.dynamic_rotate %21 by %c12_i32 dim 1 : vector<32x128xf32>, i32 -> vector<32x128xf32>
    %c0_18 = arith.constant 0 : index
    %c0_19 = arith.constant 0 : index
    %c0_20 = arith.constant 0 : index
    %23 = vector.load %arg8[%c0_18, %c0_19, %c0_20] : memref<9x1x128xf32, #tpu.memory_space<vmem>>, vector<1x1x128xf32>
    %24 = vector.shape_cast %23 : vector<1x1x128xf32> to vector<1x128xf32>
    %25 = vector.broadcast %24 : vector<1x128xf32> to vector<32x128xf32>
    %26 = arith.mulf %22, %25 : vector<32x128xf32>
    %27 = arith.truncf %26 : vector<32x128xf32> to vector<32x128xbf16>
    %c0_21 = arith.constant 0 : index
    %c0_22 = arith.constant 0 : index
    %28 = vector.load %arg10[%c0_21, %c0_22] : memref<288x128xbf16, #tpu.memory_space<vmem>>, vector<32x128xbf16>
    tpu.vector_store %arg10[%c0_21, %c0_22], %27 {strides = array<i32>} : memref<288x128xbf16, #tpu.memory_space<vmem>>, vector<32x128xbf16>,
    %c11_i32 = arith.constant 11 : i32
    %29 = tpu.dynamic_rotate %21 by %c11_i32 dim 1 : vector<32x128xf32>, i32 -> vector<32x128xf32>
    %c1 = arith.constant 1 : index
    %c0_23 = arith.constant 0 : index
    %c0_24 = arith.constant 0 : index
    %30 = vector.load %arg8[%c1, %c0_23, %c0_24] : memref<9x1x128xf32, #tpu.memory_space<vmem>>, vector<1x1x128xf32>
    %31 = vector.shape_cast %30 : vector<1x1x128xf32> to vector<1x128xf32>
    %32 = vector.broadcast %31 : vector<1x128xf32> to vector<32x128xf32>
    %33 = arith.mulf %29, %32 : vector<32x128xf32>
    %34 = arith.truncf %33 : vector<32x128xf32> to vector<32x128xbf16>
    %c32 = arith.constant 32 : index
    %c0_25 = arith.constant 0 : index
    %35 = vector.load %arg10[%c32, %c0_25] : memref<288x128xbf16, #tpu.memory_space<vmem>>, vector<32x128xbf16>
    tpu.vector_store %arg10[%c32, %c0_25], %34 {strides = array<i32>} : memref<288x128xbf16, #tpu.memory_space<vmem>>, vector<32x128xbf16>,
    %c10_i32 = arith.constant 10 : i32
    %36 = tpu.dynamic_rotate %21 by %c10_i32 dim 1 : vector<32x128xf32>, i32 -> vector<32x128xf32>
    %c2 = arith.constant 2 : index
    %c0_26 = arith.constant 0 : index
    %c0_27 = arith.constant 0 : index
    %37 = vector.load %arg8[%c2, %c0_26, %c0_27] : memref<9x1x128xf32, #tpu.memory_space<vmem>>, vector<1x1x128xf32>
    %38 = vector.shape_cast %37 : vector<1x1x128xf32> to vector<1x128xf32>
    %39 = vector.broadcast %38 : vector<1x128xf32> to vector<32x128xf32>
    %40 = arith.mulf %36, %39 : vector<32x128xf32>
    %41 = arith.truncf %40 : vector<32x128xf32> to vector<32x128xbf16>
    %c64 = arith.constant 64 : index
    %c0_28 = arith.constant 0 : index
    %42 = vector.load %arg10[%c64, %c0_28] : memref<288x128xbf16, #tpu.memory_space<vmem>>, vector<32x128xbf16>
    tpu.vector_store %arg10[%c64, %c0_28], %41 {strides = array<i32>} : memref<288x128xbf16, #tpu.memory_space<vmem>>, vector<32x128xbf16>,
    %c1_i32 = arith.constant 1 : i32
    %43 = tpu.dynamic_rotate %21 by %c1_i32 dim 1 : vector<32x128xf32>, i32 -> vector<32x128xf32>
    %c3 = arith.constant 3 : index
    %c0_29 = arith.constant 0 : index
    %c0_30 = arith.constant 0 : index
    %44 = vector.load %arg8[%c3, %c0_29, %c0_30] : memref<9x1x128xf32, #tpu.memory_space<vmem>>, vector<1x1x128xf32>
    %45 = vector.shape_cast %44 : vector<1x1x128xf32> to vector<1x128xf32>
    %46 = vector.broadcast %45 : vector<1x128xf32> to vector<32x128xf32>
    %47 = arith.mulf %43, %46 : vector<32x128xf32>
    %48 = arith.truncf %47 : vector<32x128xf32> to vector<32x128xbf16>
    %c96 = arith.constant 96 : index
    %c0_31 = arith.constant 0 : index
    %49 = vector.load %arg10[%c96, %c0_31] : memref<288x128xbf16, #tpu.memory_space<vmem>>, vector<32x128xbf16>
    tpu.vector_store %arg10[%c96, %c0_31], %48 {strides = array<i32>} : memref<288x128xbf16, #tpu.memory_space<vmem>>, vector<32x128xbf16>,
    %c4 = arith.constant 4 : index
    %c0_32 = arith.constant 0 : index
    %c0_33 = arith.constant 0 : index
    %50 = vector.load %arg8[%c4, %c0_32, %c0_33] : memref<9x1x128xf32, #tpu.memory_space<vmem>>, vector<1x1x128xf32>
    %51 = vector.shape_cast %50 : vector<1x1x128xf32> to vector<1x128xf32>
    %52 = vector.broadcast %51 : vector<1x128xf32> to vector<32x128xf32>
    %53 = arith.mulf %21, %52 : vector<32x128xf32>
    %54 = arith.truncf %53 : vector<32x128xf32> to vector<32x128xbf16>
    %c128 = arith.constant 128 : index
    %c0_34 = arith.constant 0 : index
    %55 = vector.load %arg10[%c128, %c0_34] : memref<288x128xbf16, #tpu.memory_space<vmem>>, vector<32x128xbf16>
    tpu.vector_store %arg10[%c128, %c0_34], %54 {strides = array<i32>} : memref<288x128xbf16, #tpu.memory_space<vmem>>, vector<32x128xbf16>,
    %c127_i32 = arith.constant 127 : i32
    %56 = tpu.dynamic_rotate %21 by %c127_i32 dim 1 : vector<32x128xf32>, i32 -> vector<32x128xf32>
    %c5 = arith.constant 5 : index
    %c0_35 = arith.constant 0 : index
    %c0_36 = arith.constant 0 : index
    %57 = vector.load %arg8[%c5, %c0_35, %c0_36] : memref<9x1x128xf32, #tpu.memory_space<vmem>>, vector<1x1x128xf32>
    %58 = vector.shape_cast %57 : vector<1x1x128xf32> to vector<1x128xf32>
    %59 = vector.broadcast %58 : vector<1x128xf32> to vector<32x128xf32>
    %60 = arith.mulf %56, %59 : vector<32x128xf32>
    %61 = arith.truncf %60 : vector<32x128xf32> to vector<32x128xbf16>
    %c160 = arith.constant 160 : index
    %c0_37 = arith.constant 0 : index
    %62 = vector.load %arg10[%c160, %c0_37] : memref<288x128xbf16, #tpu.memory_space<vmem>>, vector<32x128xbf16>
    tpu.vector_store %arg10[%c160, %c0_37], %61 {strides = array<i32>} : memref<288x128xbf16, #tpu.memory_space<vmem>>, vector<32x128xbf16>,
    %c118_i32 = arith.constant 118 : i32
    %63 = tpu.dynamic_rotate %21 by %c118_i32 dim 1 : vector<32x128xf32>, i32 -> vector<32x128xf32>
    %c6 = arith.constant 6 : index
    %c0_38 = arith.constant 0 : index
    %c0_39 = arith.constant 0 : index
    %64 = vector.load %arg8[%c6, %c0_38, %c0_39] : memref<9x1x128xf32, #tpu.memory_space<vmem>>, vector<1x1x128xf32>
    %65 = vector.shape_cast %64 : vector<1x1x128xf32> to vector<1x128xf32>
    %66 = vector.broadcast %65 : vector<1x128xf32> to vector<32x128xf32>
    %67 = arith.mulf %63, %66 : vector<32x128xf32>
    %68 = arith.truncf %67 : vector<32x128xf32> to vector<32x128xbf16>
    %c192 = arith.constant 192 : index
    %c0_40 = arith.constant 0 : index
    %69 = vector.load %arg10[%c192, %c0_40] : memref<288x128xbf16, #tpu.memory_space<vmem>>, vector<32x128xbf16>
    tpu.vector_store %arg10[%c192, %c0_40], %68 {strides = array<i32>} : memref<288x128xbf16, #tpu.memory_space<vmem>>, vector<32x128xbf16>,
    %c117_i32 = arith.constant 117 : i32
    %70 = tpu.dynamic_rotate %21 by %c117_i32 dim 1 : vector<32x128xf32>, i32 -> vector<32x128xf32>
    %c7 = arith.constant 7 : index
    %c0_41 = arith.constant 0 : index
    %c0_42 = arith.constant 0 : index
    %71 = vector.load %arg8[%c7, %c0_41, %c0_42] : memref<9x1x128xf32, #tpu.memory_space<vmem>>, vector<1x1x128xf32>
    %72 = vector.shape_cast %71 : vector<1x1x128xf32> to vector<1x128xf32>
    %73 = vector.broadcast %72 : vector<1x128xf32> to vector<32x128xf32>
    %74 = arith.mulf %70, %73 : vector<32x128xf32>
    %75 = arith.truncf %74 : vector<32x128xf32> to vector<32x128xbf16>
    %c224 = arith.constant 224 : index
    %c0_43 = arith.constant 0 : index
    %76 = vector.load %arg10[%c224, %c0_43] : memref<288x128xbf16, #tpu.memory_space<vmem>>, vector<32x128xbf16>
    tpu.vector_store %arg10[%c224, %c0_43], %75 {strides = array<i32>} : memref<288x128xbf16, #tpu.memory_space<vmem>>, vector<32x128xbf16>,
    %c116_i32 = arith.constant 116 : i32
    %77 = tpu.dynamic_rotate %21 by %c116_i32 dim 1 : vector<32x128xf32>, i32 -> vector<32x128xf32>
    %c8 = arith.constant 8 : index
    %c0_44 = arith.constant 0 : index
    %c0_45 = arith.constant 0 : index
    %78 = vector.load %arg8[%c8, %c0_44, %c0_45] : memref<9x1x128xf32, #tpu.memory_space<vmem>>, vector<1x1x128xf32>
    %79 = vector.shape_cast %78 : vector<1x1x128xf32> to vector<1x128xf32>
    %80 = vector.broadcast %79 : vector<1x128xf32> to vector<32x128xf32>
    %81 = arith.mulf %77, %80 : vector<32x128xf32>
    %82 = arith.truncf %81 : vector<32x128xf32> to vector<32x128xbf16>
    %c256 = arith.constant 256 : index
    %c0_46 = arith.constant 0 : index
    %83 = vector.load %arg10[%c256, %c0_46] : memref<288x128xbf16, #tpu.memory_space<vmem>>, vector<32x128xbf16>
    tpu.vector_store %arg10[%c256, %c0_46], %82 {strides = array<i32>} : memref<288x128xbf16, #tpu.memory_space<vmem>>, vector<32x128xbf16>,
    %c0_47 = arith.constant 0 : index
    %c0_48 = arith.constant 0 : index
    %84 = vector.load %arg10[%c0_47, %c0_48] : memref<288x128xbf16, #tpu.memory_space<vmem>>, vector<288x128xbf16>
    %cst_49 = arith.constant dense<0.000000e+00> : vector<32x128xf32>
    %85 = tpu.matmul %11, %84, %cst_49 {dimension_numbers = #tpu.dot_dimension_numbers<[1], [0], [0], [1], [0, 0, 1, 1], [], []>} : vector<32x288xbf16>, vector<288x128xbf16>, vector<32x128xf32> -> vector<32x128xf32>
    %86 = arith.addf %85, %12 : vector<32x128xf32>
    %c0_50 = arith.constant 0 : index
    %c0_51 = arith.constant 0 : index
    %c0_52 = arith.constant 0 : index
    %87 = vector.load %arg9[%c0_50, %c0_51, %c0_52] : memref<1x32x128xf32, #tpu.memory_space<vmem>>, vector<1x32x128xf32>
    %88 = vector.shape_cast %87 : vector<1x32x128xf32> to vector<32x128xf32>
    %89 = vector.shape_cast %86 : vector<32x128xf32> to vector<1x32x128xf32>
    tpu.vector_store %arg9[%c0_50, %c0_51, %c0_52], %89 {strides = array<i32>} : memref<1x32x128xf32, #tpu.memory_space<vmem>>, vector<1x32x128xf32>,
    return
  }
  func.func @transform_0(%arg0: i32) -> (i32, i32, i32) {
    %c0_i32 = arith.constant 0 : i32
    %c0_i32_0 = arith.constant 0 : i32
    %c0_i32_1 = arith.constant 0 : i32
    return %arg0, %c0_i32, %c0_i32_0 : i32, i32, i32
  }
  func.func @transform_1(%arg0: i32) -> (i32, i32, i32) {
    %c0_i32 = arith.constant 0 : i32
    %c0_i32_0 = arith.constant 0 : i32
    %c0_i32_1 = arith.constant 0 : i32
    return %arg0, %c0_i32, %c0_i32_0 : i32, i32, i32
  }
  func.func @transform_2(%arg0: i32) -> (i32, i32) {
    %c0_i32 = arith.constant 0 : i32
    %c0_i32_0 = arith.constant 0 : i32
    %c0_i32_1 = arith.constant 0 : i32
    return %c0_i32, %c0_i32_0 : i32, i32
  }
  func.func @transform_3(%arg0: i32) -> (i32, i32) {
    %c0_i32 = arith.constant 0 : i32
    %c0_i32_0 = arith.constant 0 : i32
    %c0_i32_1 = arith.constant 0 : i32
    return %c0_i32, %c0_i32_0 : i32, i32
  }
  func.func @transform_4(%arg0: i32) -> (i32, i32) {
    %c0_i32 = arith.constant 0 : i32
    %c0_i32_0 = arith.constant 0 : i32
    %c0_i32_1 = arith.constant 0 : i32
    return %c0_i32, %c0_i32_0 : i32, i32
  }
  func.func @transform_5(%arg0: i32) -> (i32, i32) {
    %c0_i32 = arith.constant 0 : i32
    %c0_i32_0 = arith.constant 0 : i32
    %c0_i32_1 = arith.constant 0 : i32
    return %c0_i32, %c0_i32_0 : i32, i32
  }
  func.func @transform_6(%arg0: i32) -> (i32, i32) {
    %c0_i32 = arith.constant 0 : i32
    %c0_i32_0 = arith.constant 0 : i32
    %c0_i32_1 = arith.constant 0 : i32
    return %c0_i32, %c0_i32_0 : i32, i32
  }
  func.func @transform_7(%arg0: i32) -> (i32, i32, i32) {
    %c0_i32 = arith.constant 0 : i32
    %c0_i32_0 = arith.constant 0 : i32
    %c0_i32_1 = arith.constant 0 : i32
    %c0_i32_2 = arith.constant 0 : i32
    return %c0_i32, %c0_i32_0, %c0_i32_1 : i32, i32, i32
  }
  func.func @transform_8(%arg0: i32) -> (i32, i32, i32) {
    %c0_i32 = arith.constant 0 : i32
    %c0_i32_0 = arith.constant 0 : i32
    %c0_i32_1 = arith.constant 0 : i32
    return %arg0, %c0_i32, %c0_i32_0 : i32, i32, i32
  }
}

</mosaic_0001>

<bundles_post_ra>
// kernel: tpu_custom_call.1
= control target key start
LH: loop header
LB: loop body
LE: loop exit
PB: predicated region body
PF: predicated region fallthrough
CT: control target
= control target key end

     0   :  { %s2811_s0 = inlined_call_operand.hbm [shape: f32[2,32,256], index: 0, kind: input, shape index: {}]   ;;  %s2812_s1 = inlined_call_operand.hbm [shape: f32[2,32,256], index: 1, kind: input, shape index: {}]   ;;  %s2813_s2 = inlined_call_operand.hbm [shape: bf16[256,128], index: 2, kind: input, shape index: {}]   ;;  %s2814_s3 = inlined_call_operand.hbm [shape: bf16[32,32], index: 3, kind: input, shape index: {}]   ;;  %s2815_s4 = inlined_call_operand.hbm [shape: f32[32,128], index: 4, kind: input, shape index: {}]   ;;  %s2816_s5 = inlined_call_operand.hbm [shape: bf16[32,288], index: 5, kind: input, shape index: {}]   ;;  %s2817_s6 = inlined_call_operand.hbm [shape: f32[32,128], index: 6, kind: input, shape index: {}]   ;;  %s2818_s7 = inlined_call_operand.vmem [shape: f32[9,1,128], index: 7, kind: input, shape index: {}]   ;;  %s2819_s8 = inlined_call_operand.hbm [shape: f32[2,32,128], index: 8, kind: output, shape index: {}]  }
   0x1   :  { %2824 = sst [smem:[#allocation22_spill]] %s2811_s0 }
   0x2   :  { %2825 = sst [smem:[#allocation23_spill]] %s2813_s2 }
   0x3   :  { %2826 = sst [smem:[#allocation24_spill]] %s2814_s3 }
   0x4   :  { %2827 = sst [smem:[#allocation25_spill]] %s2815_s4 }
   0x5   :  { %2828 = sst [smem:[#allocation26_spill]] %s2816_s5 }
   0x6   :  { %13 = vsyncpa [#allocation4], 0 }
   0x7   :  { %15 = vsyncpa [#allocation4 + $0x1], 0 }
   0x8   :  { %16 = vsyncpa [#allocation7], 0 }
   0x9   :  { %18 = vsyncpa [#allocation7 + $0x1], 0 }
   0xa   :  { %19 = vsyncpa [#allocation10], 0 }
   0xb   :  { %20 = vsyncpa [#allocation13], 0 }
   0xc   :  { %21 = vsyncpa [#allocation5], 0 }
   0xd   :  { %23 = vsyncpa [#allocation5 + $0x1], 0  ;;  %s2469_s27 = smov 0   ;;  %s2471_s28 = smov 0  }
   0xe   :  { %s2473_s29 = smov 0   ;;  %s2475_s30 = smov 0  }
   0xf LB: > { %s2398_s9 = smov [#allocation8]   ;;  %s2490_s11 = sadd.s32 4294967295, %s2396_s30   ;;  %s2396_s30 = sphi %s2475_s30, %s2855_s30   ;;  %s2392_s29 = sphi %s2473_s29, %s2854_s29   ;;  %s2388_s28 = sphi %s2471_s28, %s2853_s28   ;;  %s2384_s27 = sphi %s2469_s27, %s2852_s27  }
  0x10   : > { %s250_s10 = sshll.u32 %s2398_s9, 4  ;;  %p1586_p0 = scmp.ge.s32.totalorder %s2396_s30, 1  ;;  %s251_s10 = int_to_ptr.vmem [resolvable:$true] %s250_s10 }
  0x11   : > { %p2821_p1 = scmp.eq.s32.totalorder %s2490_s11, 0  ;;  %p238_p2 = scmp.lt.s32.totalorder %s2396_s30, 3 }
  0x12   : > { %s2399_s13 = smov [#allocation9]   ;;  %s2400_s16 = smov [#allocation12]  }
  0x13   : > { %p2495_p3 = pnand %p1586_p0, %p238_p2  ;;  %s263_s14 = sshll.u32 %s2399_s13, 4  ;;  %s2508_s14 = int_to_ptr.vmem [resolvable:$true] %s263_s14 }
  0x14   : > { %s289_s17 = sshll.u32 %s2400_s16, 4  ;;  %s2141_s19 = scalar_lea.vmem %s251_s10, 2048  ;;  %s2510_s17 = int_to_ptr.vmem [resolvable:$true] %s289_s17 }
  0x15   : > { %p1992_p5 = pneg %p2495_p3  ;;  %p2142_p8 = scmp.ne.s32.totalorder %s251_s10, %s2141_s19 }
  0x16   : > { %p2149_p11 = scmp.lt.s32.totalorder %s251_s10, %s251_s10  ;;  %p2150_p12 = scmp.lt.s32.totalorder %s2141_s19, %s2141_s19 }
  0x17   : > { %p2504_p6 = pnand %p1992_p5, %p2821_p1 }
  0x18   : > { %p2151_p13 = por %p2150_p12, %p2149_p11 }
  0x19   : > { %p2514_p7 = pneg %p2504_p6 }
  0x1b   : > { %p2144_p9 = pnand %p2142_p8, %p2514_p7 }
  0x1d   : > { %p2145_p10 = pneg %p2144_p9 }
  0x1f   : > { %p2152_p0 = pnand %p2151_p13, %p2145_p10 }
  0x21   : > { %2155 = shalt.err (!%p2152_p0)
}
  0x22   : > { %s2401_s20 = smov 64   ;;  %s2402_s21 = smov 4  }
  0x23   : > { %s2832_s2 = sld [smem:[#allocation23_spill]]  ;;  %s2167_s24 = scalar_lea.vmem %s2508_s14, 256 }
  0x24   : > { %p2168_p2 = scmp.ne.s32.totalorder %s2508_s14, %s2167_s24  ;;  %p2175_p9 = scmp.lt.s32.totalorder %s2508_s14, %s2508_s14 }
  0x25   : > { %p2176_p10 = scmp.lt.s32.totalorder %s2167_s24, %s2167_s24 }
  0x26   : > { %p2170_p5 = pnand %p2168_p2, %p2514_p7 }
  0x27   : > { %p2177_p11 = por %p2176_p10, %p2175_p9 }
  0x28   : > { %p2171_p8 = pneg %p2170_p5 }
  0x29   : > { %1995 = dma.hbm_to_vmem [thread:$0]  (!%p2504_p6), %s2832_s2, 2048, %s251_s10, [#allocation7], %s2401_s20, %s2401_s20, %s2402_s21  }
  0x2a   : > { %p2178_p12 = pnand %p2177_p11, %p2171_p8 }
  0x2c   : > { %2181 = shalt.err (!%p2178_p12)
}
  0x2d   : > { %s2833_s3 = sld [smem:[#allocation24_spill]]  ;;  %s2193_s9 = scalar_lea.vmem %s2510_s17, 768 }
  0x2e   : > { %p2194_p13 = scmp.ne.s32.totalorder %s2510_s17, %s2193_s9  ;;  %p2201_p5 = scmp.lt.s32.totalorder %s2510_s17, %s2510_s17 }
  0x2f   : > { %p2202_p8 = scmp.lt.s32.totalorder %s2193_s9, %s2193_s9 }
  0x30   : > { %p2196_p0 = pnand %p2194_p13, %p2514_p7 }
  0x31   : > { %p2203_p9 = por %p2202_p8, %p2201_p5 }
  0x32   : > { %p2197_p2 = pneg %p2196_p0 }
  0x33   : > { %1998 = dma.hbm_to_vmem [thread:$0]  (!%p2504_p6), %s2833_s3, 256, %s2508_s14, [#allocation10], %s2401_s20, %s2401_s20, %s2402_s21  }
  0x34   : > { %p2204_p10 = pnand %p2203_p9, %p2197_p2 }
  0x36   : > { %2207 = shalt.err (!%p2204_p10)
}
  0x37   : > { %s2403_s10 = smov 192   ;;  %s2404_s13 = smov 12  }
  0x38   : > { %s2834_s5 = sld [smem:[#allocation26_spill]]  ;;  %s2405_s14 = smov [#allocation11]  }
  0x39   : > { %s276_s20 = sshll.u32 %s2405_s14, 4  ;;  %s277_s20 = int_to_ptr.vmem [resolvable:$true] %s276_s20 }
  0x3a   : > { %s2219_s21 = scalar_lea.vmem %s277_s20, 512  ;;  %p2227_p0 = scmp.lt.s32.totalorder %s277_s20, %s277_s20 }
  0x3b   : > { %p2220_p11 = scmp.ne.s32.totalorder %s277_s20, %s2219_s21  ;;  %p2228_p2 = scmp.lt.s32.totalorder %s2219_s21, %s2219_s21 }
  0x3d   : > { %p2222_p12 = pnand %p2220_p11, %p2514_p7  ;;  %p2229_p5 = por %p2228_p2, %p2227_p0 }
  0x3e   : > { %2004 = dma.hbm_to_vmem [thread:$0]  (!%p2504_p6), %s2834_s5, 768, %s2510_s17, [#allocation13], %s2403_s10, %s2403_s10, %s2404_s13  }
  0x3f   : > { %p2223_p13 = pneg %p2222_p12 }
  0x41   : > { %p2230_p8 = pnand %p2229_p5, %p2223_p13 }
  0x43   : > { %2233 = shalt.err (!%p2230_p8)
}
  0x44   : > { %s2406_s22 = smov 128   ;;  %s2407_s23 = smov 8  }
  0x45   : > { %s2835_s4 = sld [smem:[#allocation25_spill]]  ;;  %s2408_s25 = smov [#allocation14]  }
  0x46   : > { %s302_s26 = sshll.u32 %s2408_s25, 4  ;;  %s303_s26 = int_to_ptr.vmem [resolvable:$true] %s302_s26 }
  0x47   : > { %s2245_s9 = scalar_lea.vmem %s303_s26, 512  ;;  %p2253_p12 = scmp.lt.s32.totalorder %s303_s26, %s303_s26 }
  0x48   : > { %p2246_p9 = scmp.ne.s32.totalorder %s303_s26, %s2245_s9  ;;  %p2254_p13 = scmp.lt.s32.totalorder %s2245_s9, %s2245_s9 }
  0x4a   : > { %p2248_p10 = pnand %p2246_p9, %p2514_p7  ;;  %p2255_p0 = por %p2254_p13, %p2253_p12 }
  0x4b   : > { %2001 = dma.hbm_to_vmem [thread:$0]  (!%p2504_p6), %s2835_s4, 512, %s277_s20, [#allocation10], %s2406_s22, %s2406_s22, %s2407_s23  }
  0x4c   : > { %p2249_p11 = pneg %p2248_p10 }
  0x4e   : > { %p2256_p2 = pnand %p2255_p0, %p2249_p11 }
  0x50   : > { %2259 = shalt.err (!%p2256_p2)
}
  0x51   : > { %2007 = dma.hbm_to_vmem [thread:$0]  (!%p2504_p6), %s2817_s6, 512, %s303_s26, [#allocation13], %s2406_s22, %s2406_s22, %s2407_s23  }
  0x52   : > { %s1585_s18 = sadd.s32 4294967294, %s2396_s30   ;;  %s2565_s15 = sadd.s32 1, %s2396_s30  }
  0x53   : > { %s36_s16 = sadd.s32 1, %s2392_s29  ;;  %s33_s19 = ssub.s32 %s2396_s30, %s2565_s15 }
  0x54   : > { %p43_p7 = scmp.ne.s32.totalorder %s2392_s29, %s2388_s28  ;;  %p34_p5 = scmp.eq.s32.totalorder %s33_s19, 0 }
  0x55   : > { %p44_p8 = scmp.eq.s32.totalorder %s2396_s30, 0  ;;  %p49_p9 = scmp.ne.s32.totalorder %s2388_s28, %s2384_s27 }
  0x56   : > { %p225_p10 = scmp.eq.s32.totalorder %s2490_s11, 1  ;;  %p231_p13 = scmp.eq.s32.totalorder %s1585_s18, 1 }
  0x57   : > { %s2577_s14 = scalar_select %p34_p5, %s2392_s29, %s36_s16  }
  0x58   : > { %p45_p11 = por %p44_p8, %p43_p7  ;;  %p2581_p12 = por %p2821_p1, %p49_p9 }
  0x59   : > { %p2585_p6 = por %p225_p10, %p43_p7  ;;  %p2024_p0 = scmp.lt.s32.totalorder %s2396_s30, 2 }
  0x5a   : > { %s2836_s20 = scalar_select %p2581_p12, 1, 0 }
  0x5b   : > { %s2837_s21 = scalar_select %p2585_p6, 1, 0 }
  0x5c   : > { %s319_s22 = sand.u32 1, %s2392_s29   ;;  %p2591_p2 = por %p231_p13, %p49_p9 }
  0x5d   : > { %s2595_s24 = sshll.u32 %s319_s22, 6  ;;  %s2820_s17 = sshll.u32 %s2396_s30, 10 }
  0x5e   : > { %s2838_s23 = scalar_select %p2591_p2, 1, 0 }
  0x5f   : > { %s2839_s0 = sld [smem:[#allocation22_spill]]  ;;  %s323_s10 = scalar_lea.vmem [#allocation3], %s2595_s24 }
  0x60   : > { %s330_s13 = sshll.u32 %s323_s10, 4  ;;  %p2606_p7 = pnand %p2024_p0, %p45_p11  ;;  %s2610_s13 = int_to_ptr.vmem [resolvable:$true] %s330_s13 }
  0x61   : > { %s2612_s16 = scalar_lea.sflag [#allocation4], %s319_s22 }
  0x62   : > { %p2262_p8 = pneg %p2606_p7 }
  0x65   : > { %s2603_s9 = scalar_lea.hbm %s2839_s0, %s2820_s17  ;;  %s2265_s10 = scalar_lea.hbm %s2839_s0, 2048 }
  0x66   : > { %s2260_s19 = scalar_lea.hbm %s2603_s9, 1024  ;;  %p2266_p11 = scmp.lt.s32.totalorder %s2603_s9, %s2839_s0 }
  0x67   : > { %p2261_p5 = scmp.ne.s32.totalorder %s2603_s9, %s2260_s19  ;;  %p2267_p13 = scmp.lt.s32.totalorder %s2265_s10, %s2260_s19 }
  0x69   : > { %p2263_p9 = pnand %p2262_p8, %p2261_p5  ;;  %p2268_p0 = por %p2267_p13, %p2266_p11 }
  0x6b   : > { %p2264_p10 = pneg %p2263_p9 }
  0x6d   : > { %p2269_p4 = pnand %p2268_p0, %p2264_p10 }
  0x6f   : > { %2272 = shalt.err (!%p2269_p4)
}
  0x70   : > { %s2273_s22 = scalar_lea.vmem %s2610_s13, 1024  ;;  %s2409_s25 = smov [#allocation3]  }
  0x71   : > { %p2274_p1 = scmp.ne.s32.totalorder %s2610_s13, %s2273_s22  ;;  %s2278_s26 = sshll.u32 %s2409_s25, 4  ;;  %s2279_s26 = int_to_ptr.vmem [resolvable:$false] %s2278_s26 }
  0x72   : > { %s2280_s3 = scalar_lea.vmem %s2279_s26, 2048  ;;  %p2281_p2 = scmp.lt.s32.totalorder %s2610_s13, %s2279_s26 }
  0x73   : > { %p2276_p5 = pnand %p2274_p1, %p2262_p8  ;;  %p2282_p6 = scmp.lt.s32.totalorder %s2280_s3, %s2273_s22 }
  0x75   : > { %p2277_p9 = pneg %p2276_p5  ;;  %p2283_p12 = por %p2282_p6, %p2281_p2 }
  0x77   : > { %p2284_p11 = pnand %p2283_p12, %p2277_p9 }
  0x79   : > { %2287 = shalt.err (!%p2284_p11)
}
  0x7a   : > { %s2410_s2 = smov 256   ;;  %s2411_s17 = smov 16  }
  0x7b   : > { %2011 = dma.hbm_to_vmem [thread:$0]  (!%p2606_p7), %s2603_s9, 1024, %s2610_s13, %s2612_s16, %s2410_s2, %s2410_s2, %s2411_s17  }
  0x7c   : > { %s2841_s19 = sshll.u32 %s2396_s30, 10  ;;  %s344_s25 = scalar_lea.vmem [#allocation6], %s2595_s24 }
  0x7d   : > { %s2647_s22 = scalar_lea.hbm %s2812_s1, %s2841_s19  ;;  %s351_s26 = sshll.u32 %s344_s25, 4  ;;  %s2651_s26 = int_to_ptr.vmem [resolvable:$true] %s351_s26 }
  0x7e   : > { %s340_s0 = sand.u32 1, %s2396_s30   ;;  %s2288_s5 = scalar_lea.hbm %s2647_s22, 1024 }
  0x7f   : > { %s341_s4 = scalar_lea.sflag [#allocation7], %s340_s0  ;;  %p2289_p1 = scmp.ne.s32.totalorder %s2647_s22, %s2288_s5 }
  0x80   : > { %s2293_s16 = scalar_lea.hbm %s2812_s1, 2048  ;;  %p2294_p6 = scmp.lt.s32.totalorder %s2647_s22, %s2812_s1 }
  0x81   : > { %p2291_p4 = pnand %p2289_p1, %p2262_p8  ;;  %p2295_p2 = scmp.lt.s32.totalorder %s2293_s16, %s2288_s5 }
  0x83   : > { %p2292_p12 = pneg %p2291_p4  ;;  %p2296_p10 = por %p2295_p2, %p2294_p6 }
  0x85   : > { %p2297_p13 = pnand %p2296_p10, %p2292_p12 }
  0x87   : > { %2300 = shalt.err (!%p2297_p13)
}
  0x88   : > { %s2301_s0 = scalar_lea.vmem %s2651_s26, 1024  ;;  %s2412_s24 = smov [#allocation6]  }
  0x89   : > { %p2302_p0 = scmp.ne.s32.totalorder %s2651_s26, %s2301_s0  ;;  %s2306_s10 = sshll.u32 %s2412_s24, 4  ;;  %s2307_s10 = int_to_ptr.vmem [resolvable:$false] %s2306_s10 }
  0x8a   : > { %s2308_s25 = scalar_lea.vmem %s2307_s10, 2048  ;;  %p2309_p11 = scmp.lt.s32.totalorder %s2651_s26, %s2307_s10 }
  0x8b   : > { %p2304_p5 = pnand %p2302_p0, %p2262_p8  ;;  %p2310_p1 = scmp.lt.s32.totalorder %s2308_s25, %s2301_s0 }
  0x8d   : > { %p2305_p9 = pneg %p2304_p5  ;;  %p2311_p4 = por %p2310_p1, %p2309_p11 }
  0x8f   : > { %p2312_p6 = pnand %p2311_p4, %p2305_p9 }
  0x91   : > { %2315 = shalt.err (!%p2312_p6)
}
  0x92   : > { %2014 = dma.hbm_to_vmem [thread:$0]  (!%p2606_p7), %s2647_s22, 1024, %s2651_s26, %s341_s4, %s2410_s2, %s2410_s2, %s2411_s17  }
  0x93   : > { %363 = sbr.rel (%p2495_p3) target bundleno = 1030 (0x406), region = 52  ;;  %s2681_s5 = sand.u32 (!%p2495_p3), 1, %s2388_s28  }
  0x94   : > { %s1600_s9 = sshll.u32 (!%p2495_p3), %s2681_s5, 6  ;;  %s366_s13 = scalar_lea.sflag (!%p2495_p3), [#allocation4], %s2681_s5 }
  0x95   : > { %s2685_s16 = scalar_lea.vmem (!%p2495_p3), [#allocation3], %s1600_s9  ;;  %p2842_p8 = scmp.ne.s32.totalorder (!%p2495_p3), %s2836_s20, 0 }
  0x98   : > { %2359 = dma.done.wait (%p2842_p8), %s366_s13, 1024  }
  0x99   : > { %2361 = vsyncadd (%p2842_p8), %s366_s13, 4294966272  ;;  %s374_s4 = sand.u32 1, %s2490_s11   ;;  %s2692_s18 = scalar_lea.vmem [#allocation6], %s1600_s9 }
  0x9a   : > { %s375_s12 = scalar_lea.sflag [#allocation7], %s374_s4 }
  0x9b   : > { %2363 = dma.done.wait (%p2842_p8), %s375_s12, 1024  }
  0x9c   : > { %2365 = vsyncadd (%p2842_p8), %s375_s12, 4294966272  ;;  %p2843_p3 = scmp.eq.s32.totalorder %s2490_s11, 0 }
  0x9e   : > { %2367 = dma.done.wait (%p2843_p3), [#allocation7], 2048   ;;  %p2844_p7 = pmov %p2843_p3 }
  0x9f   : > { %p2845_p12 = pmov %p2843_p3 }
  0xa0   : > { %2369 = vsyncadd (%p2844_p7), [#allocation7], 4294965248 }
  0xa1   : > { %2371 = dma.done.wait (%p2845_p12), [#allocation10], 768   ;;  %p2846_p2 = pmov %p2843_p3 }
  0xa3   : > { %2373 = vsyncadd (%p2846_p2), [#allocation10], 4294966528  ;;  %p2847_p10 = pmov %p2846_p2 }
  0xa4   : > { %p2848_p13 = pmov %p2846_p2 }
  0xa5   : > { %2375 = dma.done.wait (%p2847_p10), [#allocation13], 1280  }
  0xa6   : > { %2377 = vsyncadd (%p2848_p13), [#allocation13], 4294966016  ;;  %v2086_v0 = vld [vmem:[#allocation8 + $0x78] sm:$0xff]   ;;  %v2088_v2 = vld [vmem:[#allocation8 + $0x70] sm:$0xff]   ;;  %vm723_vm0 = vcmask 261120   ;;  %s2413_s20 = smov 1  }
  0xa7   : > { %v2087_v1 = vld [vmem:[#allocation8 + $0x38] sm:$0xff]   ;;  %1858 = vmatprep.subr.bf16.mxu0 %v2086_v0  ;;  %1886 = vmatprep.subr.bf16.mxu1 %v2086_v0  ;;  %v2089_v3 = vld [vmem:[#allocation8 + $0x30] sm:$0xff]   ;;  %v2090_v4 = vld [vmem:[#allocation8 + $0x68] sm:$0xff]   ;;  %s2414_s2 = smov 117   ;;  %s2415_s26 = smov 118  }
  0xa8   : > { %1859 = vmatpush3.bf16.msra.mxu0 %v2087_v1  ;;  %1887 = vmatpush3.bf16.msra.mxu1 %v2087_v1  ;;  %v2091_v5 = vld [vmem:[#allocation8 + $0x28] sm:$0xff]   ;;  %v2092_v6 = vld [vmem:[#allocation8 + $0x60] sm:$0xff]   ;;  %v2094_v8 = vld [vmem:[#allocation8 + $0x58] sm:$0xff]   ;;  %s2416_s19 = smov 10   ;;  %s2417_s3 = smov 127  }
  0xa9   : > { %1860 = vmatprep.subr.bf16.mxu0 %v2088_v2  ;;  %1888 = vmatprep.subr.bf16.mxu1 %v2088_v2  ;;  %v2093_v7 = vld [vmem:[#allocation8 + $0x20] sm:$0xff]   ;;  %v2095_v9 = vld [vmem:[#allocation8 + $0x18] sm:$0xff]   ;;  %v2096_v10 = vld [vmem:[#allocation8 + $0x50] sm:$0xff]   ;;  %s2418_s0 = smov 11   ;;  %s2419_s24 = smov 12  }
  0xaa   : > { %v470_v11 = vld [vmem:[%s2685_s16 + $0x8] sm:$0xff]  ;;  %v472_v12 = vld [vmem:[%s2685_s16 + $0x18] sm:$0xff]  ;;  %v2097_v17 = vld [vmem:[#allocation8 + $0x10] sm:$0xff]   ;;  %s2420_s10 = smov 116   ;;  %s1750_s13 = sshll.u32 %s2490_s11, 9 }
  0xab   : > { %v627_v13 = vld [vmem:[%s2692_s18 + $0x8] sm:$0xff]  ;;  %v478_v14 = vpack.c.bf16 %v472_v12, %v470_v11  ;;  %v629_v15 = vld [vmem:[%s2692_s18 + $0x18] sm:$0xff]  ;;  %v2100_v20 = vld [vmem:[#allocation8 + $0x40] sm:$0xff]   ;;  %s2768_s12 = scalar_lea.hbm %s2819_s8, %s1750_s13  ;;  %p2849_p5 = scmp.ne.s32.totalorder %s2837_s21, 0 }
  0xac   : > { %1861 = vmatpush3.bf16.msra.mxu0 %v2089_v3  ;;  %1889 = vmatpush3.bf16.msra.mxu1 %v2089_v3  ;;  %v635_v16 = vpack.c.bf16 %v629_v15, %v627_v13  ;;  %v2098_v18 = vld [vmem:[#allocation8 + $0x48] sm:$0xff]   ;;  %v2101_v21 = vld [vmem:[#allocation8] sm:$0xff]   ;;  %v471_v23 = vld [vmem:[%s2685_s16 + $0x10] sm:$0xff]  ;;  %s2421_s11 = smov [#allocation15]  }
  0xad   : > { %1862 = vmatprep.subr.bf16.mxu0 %v2090_v4  ;;  %1890 = vmatprep.subr.bf16.mxu1 %v2090_v4  ;;  %v2099_v19 = vld [vmem:[#allocation8 + $0x8] sm:$0xff]   ;;  %v469_v22 = vld [vmem:[%s2685_s16] sm:$0xff]  ;;  %v628_v25 = vld [vmem:[%s2692_s18 + $0x10] sm:$0xff] }
  0xae   : > { %609 = vmatprep.mubr.bf16.mxu0 %v478_v14  ;;  %670 = vmatprep.mubr.bf16.mxu1 %v635_v16  ;;  %v626_v24 = vld [vmem:[%s2692_s18] sm:$0xff]  ;;  %v474_v26 = vld [vmem:[%s2685_s16 + $0x28] sm:$0xff]  ;;  %v476_v27 = vld [vmem:[%s2685_s16 + $0x38] sm:$0xff]  ;;  %v477_v30 = vpack.c.bf16 %v471_v23, %v469_v22 }
  0xaf   : > { %v631_v28 = vld [vmem:[%s2692_s18 + $0x28] sm:$0xff]  ;;  %v633_v29 = vld [vmem:[%s2692_s18 + $0x38] sm:$0xff]  ;;  %v634_v31 = vpack.c.bf16 %v628_v25, %v626_v24  ;;  %v480_v32 = vpack.c.bf16 %v476_v27, %v474_v26  ;;  %v473_v34 = vld [vmem:[%s2685_s16 + $0x20] sm:$0xff] }
  0xb0   : > { %1863 = vmatpush3.bf16.msra.mxu0 %v2091_v5  ;;  %1891 = vmatpush3.bf16.msra.mxu1 %v2091_v5  ;;  %v637_v33 = vpack.c.bf16 %v633_v29, %v631_v28  ;;  %v475_v35 = vld [vmem:[%s2685_s16 + $0x30] sm:$0xff]  ;;  %v630_v36 = vld [vmem:[%s2692_s18 + $0x20] sm:$0xff]  ;;  %v694_v13 = vld [vmem:[#allocation11 + $0x18] sm:$0xff] }
  0xb1   : > { %1864 = vmatprep.subr.bf16.mxu0 %v2092_v6  ;;  %1892 = vmatprep.subr.bf16.mxu1 %v2092_v6  ;;  %v632_v37 = vld [vmem:[%s2692_s18 + $0x30] sm:$0xff]  ;;  %v479_v38 = vpack.c.bf16 %v475_v35, %v473_v34  ;;  %v2102_v40 = vld [vmem:[#allocation9] sm:$0xff]   ;;  %s1429_s18 = scalar_lea.sflag [#allocation5], %s2681_s5 }
  0xb2   : > { %v636_v39 = vpack.c.bf16 %v632_v37, %v630_v36 }
  0xb4   : > { %1865 = vmatpush3.bf16.msra.mxu0 %v2093_v7  ;;  %1893 = vmatpush3.bf16.msra.mxu1 %v2093_v7  ;;  %v2103_v7 = vld [vmem:[#allocation9 + $0x8] sm:$0xff]  }
  0xb5   : > { %1866 = vmatprep.subr.bf16.mxu0 %v2094_v8  ;;  %1894 = vmatprep.subr.bf16.mxu1 %v2094_v8  ;;  %v693_v8 = vld [vmem:[#allocation11 + $0x10] sm:$0xff] }
  0xb8   : > { %1867 = vmatpush3.bf16.msra.mxu0 %v2095_v9  ;;  %1895 = vmatpush3.bf16.msra.mxu1 %v2095_v9 }
  0xb9   : > { %1868 = vmatprep.subr.bf16.mxu0 %v2096_v10  ;;  %1896 = vmatprep.subr.bf16.mxu1 %v2096_v10  ;;  %v691_v10 = vld [vmem:[#allocation11] sm:$0xff] }
  0xbc   : > { %1869 = vmatpush3.bf16.msra.mxu0 %v2097_v17  ;;  %1897 = vmatpush3.bf16.msra.mxu1 %v2097_v17 }
  0xbd   : > { %1870 = vmatprep.subr.bf16.mxu0 %v2098_v18  ;;  %1898 = vmatprep.subr.bf16.mxu1 %v2098_v18  ;;  %v692_v18 = vld [vmem:[#allocation11 + $0x8] sm:$0xff] }
  0xc0   : > { %1871 = vmatpush3.bf16.msra.mxu0 %v2099_v19  ;;  %1899 = vmatpush3.bf16.msra.mxu1 %v2099_v19 }
  0xc1   : > { %1872 = vmatprep.subr.bf16.mxu0 %v2100_v20  ;;  %1900 = vmatprep.subr.bf16.mxu1 %v2100_v20 }
  0xc4   : > { %1873 = vmatpush3.bf16.msra.mxu0 %v2101_v21  ;;  %1901 = vmatpush3.bf16.msra.mxu1 %v2101_v21 }
  0xc7   : > { %610 = vmatmul.mubr.bf16.vlgmr.msra.gmra.mxu0 %v477_v30  ;;  %671 = vmatmul.mubr.bf16.vlgmr.msra.gmra.mxu1 %v634_v31 }
  0xc8   : > { %617 = vmatprep.mubr.bf16.mxu0 %v480_v32  ;;  %678 = vmatprep.mubr.bf16.mxu1 %v637_v33  ;;  %v1652_v32 = vld [vmem:[%s2818_s7 + $0x4] ss:$0 sm:$0xff] }
  0xcf   : > { %618 = vmatmul.mubr.bf16.gmra.mxu0 %v479_v38  ;;  %679 = vmatmul.mubr.bf16.gmra.mxu1 %v636_v39 }
  0xd0   : > { %1954 = vmatprep.mubr.msk.bf16.mxu0 %vm723_vm0, %v2102_v40 }
 0x187   : > { %v1874_v41 = vpop.f32.mrf.mxu0  ;;  %v1902_v42 = vpop.f32.mrf.mxu1 }
 0x189   : > { %v1875_v43 = vpop.f32.mrf.mxu0  ;;  %v1903_v44 = vpop.f32.mrf.mxu1 }
 0x18a   : > { %v1876_v61 = vadd.f32 %v1875_v43, %v1874_v41  ;;  %v1904_v62 = vadd.f32 %v1903_v44, %v1902_v42  ;;  %v2123_v43 = vld [vmem:[#allocation12 + $0x4] ss:$12 sps:$4 sm:$0xff]   ;;  %v2125_v44 = vld [vmem:[#allocation12 + $0x8] ss:$12 sps:$4 sm:$0xff]  }
 0x18b   : > { %v1877_v45 = vpop.f32.mrf.mxu0  ;;  %v1905_v46 = vpop.f32.mrf.mxu1  ;;  %1358 = vmatprep.mubr.bf16.mxu1 %v2123_v43 }
 0x18c   : > { %v707_v4 = vadd.f32 %v1904_v62, %v1876_v61  ;;  %v783_v21 = vsub.f32 %v1876_v61, %v1904_v62 }
 0x18d   : > { %v1878_v47 = vpop.f32.mrf.mxu0  ;;  %v1906_v48 = vpop.f32.mrf.mxu1 }
 0x18e   : > { %v1879_v55 = vadd.f32 %v1878_v47, %v1877_v45  ;;  %v1907_v56 = vadd.f32 %v1906_v48, %v1905_v46  ;;  %v1646_v47 = vld [vmem:[%s2818_s7 + $0x3] ss:$0 sm:$0xff] }
 0x18f   : > { %v1880_v49 = vpop.f32.mrf.mxu0  ;;  %v1908_v50 = vpop.f32.mrf.mxu1 }
 0x190   : > { %v708_v1 = vadd.f32 %v1907_v56, %v1879_v55  ;;  %v784_v31 = vsub.f32 %v1879_v55, %v1907_v56 }
 0x191   : > { %v1881_v51 = vpop.f32.mrf.mxu0  ;;  %v1909_v52 = vpop.f32.mrf.mxu1 }
 0x192   : > { %v1882_v57 = vadd.f32 %v1881_v51, %v1880_v49  ;;  %v1910_v58 = vadd.f32 %v1909_v52, %v1908_v50  ;;  %v711_v6 = vpack.c.bf16 %v708_v1, %v707_v4  ;;  %v1664_v52 = vld [vmem:[%s2818_s7 + $0x6] ss:$0 sm:$0xff] }
 0x193   : > { %v1883_v53 = vpop.f32.mrf.mxu0  ;;  %v1911_v54 = vpop.f32.mrf.mxu1 }
 0x194   : > { %v709_v2 = vadd.f32 %v1910_v58, %v1882_v57  ;;  %v785_v15 = vsub.f32 %v1882_v57, %v1910_v58 }
 0x195   : > { %v1884_v59 = vpop.f32.mrf.mxu0  ;;  %v1912_v60 = vpop.f32.mrf.mxu1 }
 0x196   : > { %v1885_v63 = vadd.f32 %v1884_v59, %v1883_v53  ;;  %v1913_v0 = vadd.f32 %v1912_v60, %v1911_v54 }
 0x198   : > { %v710_v3 = vadd.f32 %v1913_v0, %v1885_v63  ;;  %v786_v23 = vsub.f32 %v1885_v63, %v1913_v0 }
 0x19a   : > { %v712_v5 = vpack.c.bf16 %v710_v3, %v709_v2  ;;  %v1670_v3 = vld [vmem:[%s2818_s7 + $0x7] ss:$0 sm:$0xff] }
 0x19c   : > { %1950 = vmatprep.subr.bf16.mxu0 %v712_v5 }
 0x19d   : > { %1951 = vmatpush3.bf16.msra.mxu0 %v712_v5 }
 0x19e   : > { %1952 = vmatprep.subr.bf16.mxu0 %v711_v6 }
 0x1a1   : > { %1953 = vmatpush3.bf16.msra.mxu0 %v711_v6 }
 0x1a4   : > { %1955 = vmatmul.mubr.msk.bf16.vlgmr.msra.gmra.mxu0 %vm723_vm0, %v2103_v7 }
 0x1a5   : > { %1962 = vmatprep.mubr.msk.bf16.mxu0 %vm723_vm0, %v2125_v44 }
 0x264   : > { %v1956_v9 = vpop.f32.mrf.mxu0 }
 0x265   : > { %v773_v11 = vadd.f32 %v1956_v9, %v693_v8 }
 0x266   : > { %v764_v12 = vpop.f32.mrf.mxu0 }
 0x267   : > { %v781_v14 = vmax.f32 %v773_v11, 0.0  ;;  %v765_v16 = vadd.f32 %v764_v12, %v691_v10 }
 0x268   : > { %v1957_v17 = vpop.f32.mrf.mxu0 }
 0x269   : > { %v789_v19 = vmul.f32 %v785_v15, %v781_v14  ;;  %v779_v20 = vmax.f32 %v765_v16, 0.0  ;;  %v776_v22 = vadd.f32 %v1957_v17, %v694_v13 }
 0x26a   : > { %v767_v24 = vpop.f32.mrf.mxu0 }
 0x26b   : > { %v793_v25 = vadd.f32 %v1910_v58, %v789_v19  ;;  %v787_v26 = vmul.f32 %v783_v21, %v779_v20  ;;  %v782_v27 = vmax.f32 %v776_v22, 0.0  ;;  %v768_v28 = vadd.f32 %v767_v24, %v692_v18  ;;  %v1640_v58 = vld [vmem:[%s2818_s7 + $0x2] ss:$0 sm:$0xff]  ;;  %v1658_v18 = vld [vmem:[%s2818_s7 + $0x5] ss:$0 sm:$0xff] }
 0x26d   : > { %v790_v29 = vmul.f32 %v786_v23, %v782_v27  ;;  %v780_v30 = vmax.f32 %v768_v28, 0.0  ;;  %918 = vrot.lane.b32.xlu1 %v793_v25, %s2413_s20  ;;  %1070 = vrot.lane.b32.xlu0 %v793_v25, %s2414_s2  ;;  %v791_v33 = vadd.f32 %v1904_v62, %v787_v26  ;;  %v964_v37 = vmul.f32 %v1652_v32, %v793_v25  ;;  %v1634_v28 = vld [vmem:[%s2818_s7 + $0x1] ss:$0 sm:$0xff] }
 0x26f   : > { %v794_v34 = vadd.f32 %v1913_v0, %v790_v29  ;;  %v788_v35 = vmul.f32 %v784_v31, %v780_v30  ;;  %v962_v40 = vmul.f32 %v1652_v32, %v791_v33 }
 0x271   : > { %v792_v36 = vadd.f32 %v1907_v56, %v788_v35  ;;  %1030 = vrot.lane.b32.xlu0 %v793_v25, %s2415_s26  ;;  %920 = vrot.lane.b32.xlu1 %v794_v34, %s2413_s20  ;;  %v965_v38 = vmul.f32 %v1652_v32, %v794_v34 }
 0x273   : > { %v1799_v39 = vpack.c.bf16 %v965_v38, %v964_v37  ;;  %v963_v41 = vmul.f32 %v1652_v32, %v792_v36 }
 0x275   : > { %878 = vrot.lane.b32.xlu0 %v793_v25, %s2416_s19  ;;  %1032 = vrot.lane.b32.xlu1 %v794_v34, %s2415_s26  ;;  %1849 = vst [vmem:[#allocation2 + $0x48] sm:$0xff] %v1799_v39   ;;  %v1794_v42 = vpack.c.bf16 %v963_v41, %v962_v40 }
 0x277   : > { %1848 = vst [vmem:[#allocation2 + $0x40] sm:$0xff] %v1794_v42  }
 0x279   : > { %880 = vrot.lane.b32.xlu1 %v794_v34, %s2416_s19  ;;  %1066 = vrot.lane.b32.xlu0 %v791_v33, %s2414_s2 }
 0x27d   : > { %992 = vrot.lane.b32.xlu1 %v794_v34, %s2417_s3  ;;  %914 = vrot.lane.b32.xlu0 %v791_v33, %s2413_s20 }
 0x281   : > { %840 = vrot.lane.b32.xlu1 %v794_v34, %s2418_s0  ;;  %1072 = vrot.lane.b32.xlu0 %v794_v34, %s2414_s2 }
 0x285   : > { %1068 = vrot.lane.b32.xlu1 %v792_v36, %s2414_s2  ;;  %1026 = vrot.lane.b32.xlu0 %v791_v33, %s2415_s26  ;;  %s2320_s2 = sshll.u32 %s2421_s11, 4  ;;  %s2321_s2 = int_to_ptr.vmem [resolvable:$false] %s2320_s2 }
 0x286   : > { %s2322_s17 = scalar_lea.vmem %s2321_s2, 1024 }
 0x289   : > { %916 = vrot.lane.b32.xlu1 %v792_v36, %s2413_s20  ;;  %874 = vrot.lane.b32.xlu0 %v791_v33, %s2416_s19 }
 0x28d   : > { %1028 = vrot.lane.b32.xlu1 %v792_v36, %s2415_s26  ;;  %990 = vrot.lane.b32.xlu0 %v793_v25, %s2417_s3 }
 0x291   : > { %876 = vrot.lane.b32.xlu1 %v792_v36, %s2416_s19  ;;  %838 = vrot.lane.b32.xlu0 %v793_v25, %s2418_s0 }
 0x295   : > { %988 = vrot.lane.b32.xlu1 %v792_v36, %s2417_s3  ;;  %986 = vrot.lane.b32.xlu0 %v791_v33, %s2417_s3 }
 0x299   : > { %836 = vrot.lane.b32.xlu1 %v792_v36, %s2418_s0  ;;  %834 = vrot.lane.b32.xlu0 %v791_v33, %s2418_s0 }
 0x29d   : > { %801 = vrot.lane.b32.xlu1 %v794_v34, %s2419_s24  ;;  %799 = vrot.lane.b32.xlu0 %v793_v25, %s2419_s24 }
 0x2a1   : > { %797 = vrot.lane.b32.xlu1 %v792_v36, %s2419_s24  ;;  %795 = vrot.lane.b32.xlu0 %v791_v33, %s2419_s24 }
 0x2a5   : > { %1112 = vrot.lane.b32.xlu1 %v794_v34, %s2420_s10  ;;  %1110 = vrot.lane.b32.xlu0 %v793_v25, %s2420_s10 }
 0x2a9   : > { %1108 = vrot.lane.b32.xlu1 %v792_v36, %s2420_s10  ;;  %1106 = vrot.lane.b32.xlu0 %v791_v33, %s2420_s10  ;;  %s1607_s10 = sshll.u32 %s2681_s5, 5 }
 0x2aa   : > { %s435_s25 = scalar_lea.vmem [#allocation15], %s1607_s10 }
 0x2ab   : > { %s1442_s9 = sshll.u32 %s435_s25, 4  ;;  %s2763_s9 = int_to_ptr.vmem [resolvable:$true] %s1442_s9 }
 0x2ac   : > { %s2316_s20 = scalar_lea.vmem %s2763_s9, 512  ;;  %p2323_p1 = scmp.lt.s32.totalorder %s2763_s9, %s2321_s2 }
 0x2ad   : > { %p2317_p0 = scmp.ne.s32.totalorder %s2763_s9, %s2316_s20  ;;  %p2324_p4 = scmp.lt.s32.totalorder %s2322_s17, %s2316_s20 }
 0x2af   : > { %p2318_p9 = pnand %p2317_p0, %p2849_p5  ;;  %p2325_p6 = por %p2324_p4, %p2323_p1 }
 0x2b1   : > { %p2319_p11 = pneg %p2318_p9 }
 0x2b3   : > { %p2326_p8 = pnand %p2325_p6, %p2319_p11 }
 0x2df   : > { %v919_v45 = vpop.permute.xlu1 %918  ;;  %v1071_v46 = vpop.permute.xlu0 %1070 }
 0x2e0   : > { %v932_v50 = vmul.f32 %v1646_v47, %v919_v45  ;;  %v1084_v6 = vmul.f32 %v1670_v3, %v1071_v46 }
 0x2e3   : > { %v1031_v48 = vpop.permute.xlu0 %1030  ;;  %v921_v49 = vpop.permute.xlu1 %920 }
 0x2e4   : > { %v933_v51 = vmul.f32 %v1646_v47, %v921_v49  ;;  %v1044_v56 = vmul.f32 %v1664_v52, %v1031_v48 }
 0x2e6   : > { %v1789_v53 = vpack.c.bf16 %v933_v51, %v932_v50 }
 0x2e7   : > { %v879_v54 = vpop.permute.xlu0 %878  ;;  %v1033_v55 = vpop.permute.xlu1 %1032 }
 0x2e8   : > { %1847 = vst [vmem:[#allocation2 + $0x38] sm:$0xff] %v1789_v53   ;;  %v1045_v57 = vmul.f32 %v1664_v52, %v1033_v55  ;;  %v892_v62 = vmul.f32 %v1640_v58, %v879_v54  ;;  %v1628_v53 = vld [vmem:[%s2818_s7] ss:$0 sm:$0xff] }
 0x2ea   : > { %v1819_v59 = vpack.c.bf16 %v1045_v57, %v1044_v56 }
 0x2eb   : > { %v881_v60 = vpop.permute.xlu1 %880  ;;  %v1067_v61 = vpop.permute.xlu0 %1066 }
 0x2ec   : > { %1853 = vst [vmem:[#allocation2 + $0x68] sm:$0xff] %v1819_v59   ;;  %v893_v63 = vmul.f32 %v1640_v58, %v881_v60  ;;  %v1082_v11 = vmul.f32 %v1670_v3, %v1067_v61 }
 0x2ee   : > { %v1779_v0 = vpack.c.bf16 %v893_v63, %v892_v62 }
 0x2ef   : > { %v993_v1 = vpop.permute.xlu1 %992  ;;  %v915_v2 = vpop.permute.xlu0 %914  ;;  %v2105_v27 = vld [vmem:[#allocation2 + $0x38] sm:$0xff]  }
 0x2f0   : > { %1845 = vst [vmem:[#allocation2 + $0x28] sm:$0xff] %v1779_v0   ;;  %v930_v16 = vmul.f32 %v1646_v47, %v915_v2  ;;  %v1005_v23 = vmul.f32 %v1658_v18, %v993_v1 }
 0x2f3   : > { %v841_v4 = vpop.permute.xlu1 %840  ;;  %v1073_v5 = vpop.permute.xlu0 %1072  ;;  %v2108_v45 = vld [vmem:[#allocation2 + $0x68] sm:$0xff]  }
 0x2f4   : > { %v1085_v7 = vmul.f32 %v1670_v3, %v1073_v5  ;;  %v853_v34 = vmul.f32 %v1634_v28, %v841_v4  ;;  %v1676_v4 = vld [vmem:[%s2818_s7 + $0x8] ss:$0 sm:$0xff] }
 0x2f6   : > { %v1829_v8 = vpack.c.bf16 %v1085_v7, %v1084_v6 }
 0x2f7   : > { %v1069_v9 = vpop.permute.xlu1 %1068  ;;  %v1027_v10 = vpop.permute.xlu0 %1026 }
 0x2f8   : > { %1855 = vst [vmem:[#allocation2 + $0x78] sm:$0xff] %v1829_v8   ;;  %v1083_v12 = vmul.f32 %v1670_v3, %v1069_v9  ;;  %v1042_v24 = vmul.f32 %v1664_v52, %v1027_v10 }
 0x2fa   : > { %v1824_v13 = vpack.c.bf16 %v1083_v12, %v1082_v11  ;;  %v2116_v11 = vld [vmem:[#allocation2 + $0x48] sm:$0xff]  }
 0x2fb   : > { %v917_v14 = vpop.permute.xlu1 %916  ;;  %v875_v15 = vpop.permute.xlu0 %874 }
 0x2fc   : > { %1854 = vst [vmem:[#allocation2 + $0x70] sm:$0xff] %v1824_v13   ;;  %v931_v17 = vmul.f32 %v1646_v47, %v917_v14  ;;  %v890_v35 = vmul.f32 %v1640_v58, %v875_v15  ;;  %v2109_v47 = vld [vmem:[#allocation2 + $0x28] sm:$0xff]  }
 0x2fe   : > { %v1784_v19 = vpack.c.bf16 %v931_v17, %v930_v16 }
 0x2ff   : > { %v1029_v20 = vpop.permute.xlu1 %1028  ;;  %v991_v21 = vpop.permute.xlu0 %990  ;;  %v2104_v22 = vld [vmem:[#allocation2 + $0x78] sm:$0xff]  }
 0x300   : > { %1846 = vst [vmem:[#allocation2 + $0x30] sm:$0xff] %v1784_v19   ;;  %v1043_v25 = vmul.f32 %v1664_v52, %v1029_v20  ;;  %v1004_v26 = vmul.f32 %v1658_v18, %v991_v21  ;;  %1918 = vmatprep.subr.bf16.mxu1 %v2104_v22  ;;  %v2121_v21 = vld [vmem:[#allocation12] ss:$12 sps:$4 sm:$0xff]   ;;  %v2127_v22 = vld [vmem:[#allocation12 + $0x1c] ss:$12 sps:$4 sm:$0xff]  }
 0x301   : > { %1919 = vmatpush3.bf16.msra.mxu1 %v2105_v27 }
 0x302   : > { %v1814_v29 = vpack.c.bf16 %v1043_v25, %v1042_v24  ;;  %v1809_v30 = vpack.c.bf16 %v1005_v23, %v1004_v26  ;;  %v2129_v25 = vld [vmem:[#allocation12 + $0x18] ss:$12 sps:$4 sm:$0xff]   ;;  %v2126_v26 = vld [vmem:[#allocation12 + $0x20] ss:$12 sps:$4 sm:$0xff]  }
 0x303   : > { %v877_v31 = vpop.permute.xlu1 %876  ;;  %v839_v32 = vpop.permute.xlu0 %838  ;;  %v2106_v33 = vld [vmem:[#allocation2 + $0x70] sm:$0xff]  }
 0x304   : > { %1852 = vst [vmem:[#allocation2 + $0x60] sm:$0xff] %v1814_v29   ;;  %1851 = vst [vmem:[#allocation2 + $0x58] sm:$0xff] %v1809_v30   ;;  %v891_v36 = vmul.f32 %v1640_v58, %v877_v31  ;;  %v852_v37 = vmul.f32 %v1634_v28, %v839_v32  ;;  %1920 = vmatprep.subr.bf16.mxu1 %v2106_v33  ;;  %v703_v32 = vld [vmem:[#allocation14] sm:$0xff] }
 0x306   : > { %v1774_v38 = vpack.c.bf16 %v891_v36, %v890_v35  ;;  %v1769_v39 = vpack.c.bf16 %v853_v34, %v852_v37  ;;  %v705_v37 = vld [vmem:[#allocation14 + $0x10] sm:$0xff] }
 0x307   : > { %v989_v40 = vpop.permute.xlu1 %988  ;;  %v987_v41 = vpop.permute.xlu0 %986  ;;  %v2107_v42 = vld [vmem:[#allocation2 + $0x30] sm:$0xff]  }
 0x308   : > { %1844 = vst [vmem:[#allocation2 + $0x20] sm:$0xff] %v1774_v38   ;;  %1843 = vst [vmem:[#allocation2 + $0x18] sm:$0xff] %v1769_v39   ;;  %v1003_v43 = vmul.f32 %v1658_v18, %v989_v40  ;;  %v1002_v44 = vmul.f32 %v1658_v18, %v987_v41  ;;  %1921 = vmatpush3.bf16.msra.mxu1 %v2107_v42  ;;  %v2118_v18 = vld [vmem:[#allocation2 + $0x40] sm:$0xff]   ;;  %v704_v41 = vld [vmem:[#allocation14 + $0x8] sm:$0xff] }
 0x309   : > { %1922 = vmatprep.subr.bf16.mxu1 %v2108_v45 }
 0x30a   : > { %v1804_v46 = vpack.c.bf16 %v1003_v43, %v1002_v44 }
 0x30b   : > { %v837_v48 = vpop.permute.xlu1 %836  ;;  %v835_v49 = vpop.permute.xlu0 %834  ;;  %v2110_v50 = vld [vmem:[#allocation2 + $0x60] sm:$0xff]   ;;  %v2112_v60 = vld [vmem:[#allocation2 + $0x58] sm:$0xff]  }
 0x30c   : > { %1850 = vst [vmem:[#allocation2 + $0x50] sm:$0xff] %v1804_v46   ;;  %v851_v51 = vmul.f32 %v1634_v28, %v837_v48  ;;  %v850_v52 = vmul.f32 %v1634_v28, %v835_v49  ;;  %1923 = vmatpush3.bf16.msra.mxu1 %v2109_v47  ;;  %v706_v47 = vld [vmem:[#allocation14 + $0x18] sm:$0xff] }
 0x30d   : > { %1924 = vmatprep.subr.bf16.mxu1 %v2110_v50 }
 0x30e   : > { %v1764_v54 = vpack.c.bf16 %v851_v51, %v850_v52 }
 0x30f   : > { %v802_v55 = vpop.permute.xlu1 %801  ;;  %v800_v56 = vpop.permute.xlu0 %799  ;;  %v2111_v57 = vld [vmem:[#allocation2 + $0x20] sm:$0xff]   ;;  %v2113_v62 = vld [vmem:[#allocation2 + $0x18] sm:$0xff]  }
 0x310   : > { %1842 = vst [vmem:[#allocation2 + $0x10] sm:$0xff] %v1764_v54   ;;  %v813_v58 = vmul.f32 %v1628_v53, %v802_v55  ;;  %v812_v59 = vmul.f32 %v1628_v53, %v800_v56  ;;  %1925 = vmatpush3.bf16.msra.mxu1 %v2111_v57 }
 0x311   : > { %1926 = vmatprep.subr.bf16.mxu1 %v2112_v60 }
 0x312   : > { %v1759_v61 = vpack.c.bf16 %v813_v58, %v812_v59 }
 0x313   : > { %v798_v63 = vpop.permute.xlu1 %797  ;;  %v796_v0 = vpop.permute.xlu0 %795  ;;  %v2114_v1 = vld [vmem:[#allocation2 + $0x50] sm:$0xff]  }
 0x314   : > { %1841 = vst [vmem:[#allocation2 + $0x8] sm:$0xff] %v1759_v61   ;;  %v811_v2 = vmul.f32 %v1628_v53, %v798_v63  ;;  %v810_v3 = vmul.f32 %v1628_v53, %v796_v0  ;;  %1927 = vmatpush3.bf16.msra.mxu1 %v2113_v62 }
 0x315   : > { %1928 = vmatprep.subr.bf16.mxu1 %v2114_v1 }
 0x316   : > { %v1754_v5 = vpack.c.bf16 %v811_v2, %v810_v3 }
 0x317   : > { %v1113_v6 = vpop.permute.xlu1 %1112  ;;  %v1111_v7 = vpop.permute.xlu0 %1110  ;;  %v2115_v8 = vld [vmem:[#allocation2 + $0x10] sm:$0xff]  }
 0x318   : > { %1755 = vst [vmem:[#allocation2] sm:$0xff] %v1754_v5   ;;  %v1125_v9 = vmul.f32 %v1676_v4, %v1113_v6  ;;  %v1124_v10 = vmul.f32 %v1676_v4, %v1111_v7  ;;  %1929 = vmatpush3.bf16.msra.mxu1 %v2115_v8 }
 0x319   : > { %1930 = vmatprep.subr.bf16.mxu1 %v2116_v11 }
 0x31a   : > { %v1839_v12 = vpack.c.bf16 %v1125_v9, %v1124_v10 }
 0x31b   : > { %v1109_v13 = vpop.permute.xlu1 %1108  ;;  %v1107_v14 = vpop.permute.xlu0 %1106  ;;  %v2117_v15 = vld [vmem:[#allocation2 + $0x8] sm:$0xff]  }
 0x31c   : > { %1857 = vst [vmem:[#allocation2 + $0x88] sm:$0xff] %v1839_v12   ;;  %v1123_v16 = vmul.f32 %v1676_v4, %v1109_v13  ;;  %v1122_v17 = vmul.f32 %v1676_v4, %v1107_v14  ;;  %1931 = vmatpush3.bf16.msra.mxu1 %v2117_v15 }
 0x31d   : > { %1932 = vmatprep.subr.bf16.mxu1 %v2118_v18 }
 0x31e   : > { %v1834_v19 = vpack.c.bf16 %v1123_v16, %v1122_v17 }
 0x31f   : > { %v2119_v20 = vld [vmem:[#allocation2] sm:$0xff]  }
 0x320   : > { %1856 = vst [vmem:[#allocation2 + $0x80] sm:$0xff] %v1834_v19   ;;  %1933 = vmatpush3.bf16.msra.mxu1 %v2119_v20 }
 0x323   : > { %v2120_v23 = vld [vmem:[#allocation2 + $0x88] sm:$0xff]   ;;  %1359 = vmatmul.mubr.bf16.vlgmr.msra.gmra.mxu1 %v2121_v21 }
 0x324   : > { %1958 = vmatprep.subr.bf16.mxu0 %v2120_v23  ;;  %1366 = vmatprep.mubr.bf16.mxu1 %v2127_v22 }
 0x325   : > { %1959 = vmatpush3.bf16.msra.mxu0 %v2120_v23 }
 0x327   : > { %v2124_v24 = vld [vmem:[#allocation2 + $0x80] sm:$0xff]  }
 0x328   : > { %1960 = vmatprep.subr.bf16.mxu0 %v2124_v24 }
 0x329   : > { %1961 = vmatpush3.bf16.msra.mxu0 %v2124_v24 }
 0x32b   : > { %1367 = vmatmul.mubr.bf16.gmra.mxu1 %v2129_v25 }
 0x32c   : > { %1963 = vmatmul.mubr.msk.bf16.vlgmr.msra.gmra.mxu0 %vm723_vm0, %v2126_v26 }
 0x3e3   : > { %v1934_v27 = vpop.f32.mrf.mxu1 }
 0x3e5   : > { %v1935_v28 = vpop.f32.mrf.mxu1 }
 0x3e6   : > { %v1936_v30 = vadd.f32 %v1935_v28, %v1934_v27 }
 0x3e7   : > { %v1937_v29 = vpop.f32.mrf.mxu1 }
 0x3e8   : > { %v1361_v36 = vadd.f32 %v1936_v30, %v703_v32 }
 0x3e9   : > { %v1938_v31 = vpop.f32.mrf.mxu1 }
 0x3ea   : > { %v1939_v35 = vadd.f32 %v1938_v31, %v1937_v29 }
 0x3eb   : > { %v1940_v33 = vpop.f32.mrf.mxu1 }
 0x3ec   : > { %v1964_v34 = vpop.f32.mrf.mxu0  ;;  %v1364_v46 = vadd.f32 %v1939_v35, %v704_v41 }
 0x3ed   : > { %v1941_v38 = vpop.f32.mrf.mxu1 }
 0x3ee   : > { %v1409_v39 = vpop.f32.mrf.mxu0  ;;  %v1942_v40 = vadd.f32 %v1941_v38, %v1940_v33 }
 0x3ef   : > { %v1410_v42 = vadd.f32 %v1409_v39, %v1361_v36  ;;  %v1943_v43 = vpop.f32.mrf.mxu1 }
 0x3f0   : > { %v1369_v44 = vadd.f32 %v1942_v40, %v705_v37  ;;  %v1965_v45 = vpop.f32.mrf.mxu0 }
 0x3f1   : > { %1424 = vst [vmem:[%s435_s25] sm:$0xff] %v1410_v42  ;;  %v1944_v48 = vpop.f32.mrf.mxu1 }
 0x3f2   : > { %v1418_v49 = vadd.f32 %v1964_v34, %v1369_v44  ;;  %v1412_v50 = vpop.f32.mrf.mxu0  ;;  %v1945_v51 = vadd.f32 %v1944_v48, %v1943_v43 }
 0x3f3   : > { %v1413_v52 = vadd.f32 %v1412_v50, %v1364_v46 }
 0x3f4   : > { %1426 = vst [vmem:[%s435_s25 + $0x10] sm:$0xff] %v1418_v49  ;;  %v1372_v53 = vadd.f32 %v1945_v51, %v706_v47 }
 0x3f5   : > { %1425 = vst [vmem:[%s435_s25 + $0x8] sm:$0xff] %v1413_v52 }
 0x3f6   : > { %v1421_v54 = vadd.f32 %v1965_v45, %v1372_v53 }
 0x3f8   : > { %1427 = vst [vmem:[%s435_s25 + $0x18] sm:$0xff] %v1421_v54 }
 0x3f9   : > { %2329 = shalt.err (!%p2326_p8)
}
 0x3fa   : > { %s2330_s22 = scalar_lea.hbm %s2768_s12, 512  ;;  %s2334_s3 = scalar_lea.hbm %s2819_s8, 1024 }
 0x3fb   : > { %p2331_p3 = scmp.ne.s32.totalorder %s2768_s12, %s2330_s22  ;;  %p2335_p2 = scmp.lt.s32.totalorder %s2768_s12, %s2819_s8 }
 0x3fc   : > { %p2336_p10 = scmp.lt.s32.totalorder %s2334_s3, %s2330_s22 }
 0x3fd   : > { %p2332_p7 = pnand %p2331_p3, %p2849_p5 }
 0x3fe   : > { %p2337_p13 = por %p2336_p10, %p2335_p2 }
 0x3ff   : > { %p2333_p12 = pneg %p2332_p7 }
 0x401   : > { %p2338_p0 = pnand %p2337_p13, %p2333_p12 }
 0x403   : > { %2341 = shalt.err (!%p2338_p0)
}
 0x404   : > { %s2422_s10 = smov 128   ;;  %s2423_s25 = smov 8  }
 0x405   : > { %1990 = dma.vmem_to_hbm [thread:$0]  (%p2849_p5), %s2763_s9, 512, %s2768_s12, %s1429_s18, %s2422_s10, %s2422_s10, %s2423_s25  }
 0x406 PF: > { %s1457_s13 = sand.u32 1, %s2384_s27   ;;  %p2850_p9 = scmp.ne.s32.totalorder %s2838_s23, 0 }
 0x407   : > { %p2851_p11 = scmp.ge.s32.totalorder %s2396_s30, 2  ;;  %s1458_s16 = scalar_lea.sflag [#allocation5], %s1457_s13 }
 0x409   : > { %p2016_p1 = pnand %p2851_p11, %p2850_p9 }
 0x40b   : > { %p2017_p4 = pneg %p2016_p1 }
 0x40d   : > { %2379 = dma.done.wait (%p2017_p4), %s1458_s16, 512  }
 0x40e   : > { %2381 = vsyncadd (%p2017_p4), %s1458_s16, 4294966784  ;;  %p26_p6 = scmp.ge.s32.totalorder %s2565_s15, 4   ;;  %s2852_s27 = smov %s2388_s28 }
 0x40f   : > { %s2853_s28 = smov %s2392_s29  ;;  %s2854_s29 = smov %s2577_s14 }
 0x410   : > { %s2855_s30 = smov %s2565_s15  ;;  %28 = sbr.rel (!%p26_p6) target bundleno = 15 (0xf), region = 138 }
 0x415   :  { %1463 = vsyncpa [#allocation4], 1 }
 0x416   :  { %1465 = vsyncpa [#allocation4 + $0x1], 1 }
 0x417   :  { %1466 = vsyncpa [#allocation7], 1 }
 0x418   :  { %1468 = vsyncpa [#allocation7 + $0x1], 1 }
 0x419   :  { %1469 = vsyncpa [#allocation10], 1 }
 0x41a   :  { %1470 = vsyncpa [#allocation13], 1 }
 0x41b   :  { %1471 = vsyncpa [#allocation5], 1 }
 0x41c   :  { %1473 = vsyncpa [#allocation5 + $0x1], 1 }

</bundles_post_ra>
